<compile_context>
chip_gen: v7x
topology: tpu7x:2x2x1
jax: 0.10.0
libtpu: 0.0.40
codegen_flags: <defaults>
</compile_context>

<pallas_src>
import functools

import jax
import jax.numpy as jnp
from jax.experimental import pallas as pl
from jax.experimental.pallas import tpu as pltpu


def _round_up(v, m):
    return ((v + m - 1) // m) * m


def _mynet2_kernel(sref, iref, fref, o_ref, *,
                   B, K, r_x, r_ea, r_x2d, r_nw1, r_nw2, r_nb1, r_nb2, r_nw3):
    """Entire MyNet2 forward in one VMEM-resident step.

    sref : (16,) f32 SMEM  -> [ew1(4), eb1(4), ew2(4), eb2, root, conv_bias, nb3]
    iref : (3, W) int32    -> rows: src, dst // K, dst % K  (padded lanes = -1)
    fref : (R, W) f32      -> rows: x_row, ea_row, x2d (B rows), nw1 (K x 8),
                              nw2 (8 x 8), nb1, nb2, nw3^T  (see wrapper offsets)
    """
    f32 = jnp.float32
    W = fref.shape[1]

    # ---- edge network h_theta: Linear(1,4) -> ReLU -> Linear(4,1), unrolled on VPU
    ea = fref[r_ea:r_ea + 1, :]                                   # (1, W)
    w_edge = jnp.zeros((1, W), f32)
    for j in range(4):
        hj = jnp.maximum(ea * sref[j] + sref[4 + j], 0.0)         # (1, W)
        w_edge = w_edge + hj * sref[8 + j]
    w_edge = w_edge + sref[12]                                    # + eb2

    # ---- gather x[src]: lane-dense x row @ one-hot(src) mask (single MXU matmul)
    x_row = fref[r_x:r_x + 1, :]                                  # (1, W)
    src_row = iref[0:1, :]                                        # (1, W) int32
    node_iota = jax.lax.broadcasted_iota(jnp.int32, (W, W), 0)
    src_mask = (node_iota == src_row).astype(f32)                 # (W, W)
    x_src = jnp.dot(x_row, src_mask, preferred_element_type=f32)  # (1, W)

    msg = x_src * w_edge                                          # per-edge message (1, W)

    # ---- scatter-add straight into (B, K) layout:
    #      agg[b, k] = sum_e [dst_e//K == b] * [dst_e%K == k] * msg_e
    dst_g = iref[1:2, :]                                          # (1, W)
    dst_l = iref[2:3, :]                                          # (1, W)
    graph_iota = jax.lax.broadcasted_iota(jnp.int32, (B, W), 0)
    graph_mask = (graph_iota == dst_g).astype(f32)                # (B, W)
    weighted = graph_mask * msg                                   # (B, W)
    local_iota = jax.lax.broadcasted_iota(jnp.int32, (K, W), 0)
    local_mask = (local_iota == dst_l).astype(f32)                # (K, W)
    agg = jax.lax.dot_general(weighted, local_mask,               # (B, K)  == weighted @ local_mask.T
                              dimension_numbers=(((1,), (1,)), ((), ())),
                              preferred_element_type=f32)

    # ---- NNConv root term + bias
    x2d = fref[r_x2d:r_x2d + B, 0:K]                              # (B, K)
    nodes = agg + x2d * sref[13] + sref[14]

    # ---- MLP head: Linear(37,8)+ReLU -> Linear(8,8)+ReLU -> Linear(8,1) -> Sigmoid -> *11
    nw1 = fref[r_nw1:r_nw1 + K, 0:8]                              # (K, 8)
    nb1 = fref[r_nb1:r_nb1 + 1, 0:8]                              # (1, 8)
    z = jnp.dot(nodes, nw1, preferred_element_type=f32) + nb1
    z = jnp.maximum(z, 0.0)
    nw2 = fref[r_nw2:r_nw2 + 8, 0:8]                              # (8, 8)
    nb2 = fref[r_nb2:r_nb2 + 1, 0:8]                              # (1, 8)
    z = jnp.dot(z, nw2, preferred_element_type=f32) + nb2
    z = jnp.maximum(z, 0.0)
    nw3_row = fref[r_nw3:r_nw3 + 1, 0:8]                          # (1, 8) == nw3^T
    z3 = jnp.sum(z * nw3_row, axis=1, keepdims=True) + sref[15]   # (B, 1), VPU + lane reduce
    out = 11.0 / (1.0 + jnp.exp(-z3))                             # sigmoid fused with LambdaLayer(*11)
    o_ref[...] = out.astype(o_ref.dtype)


def mynet2_forward(x, src, dst, edge_attr, params, *, batch_len):
    """Pallas implementation of MyNet2.forward.

    x: (N, 1) node features, src/dst: (E,) int32 edge endpoints (edge_index[0/1]),
    edge_attr: (E, 1).  Returns (batch_len, 1).
    """
    N = x.shape[0]
    E = src.shape[0]
    B = batch_len
    K = N // B                               # nodes per graph (= 37 for MyNet2)
    assert N == B * K

    f32 = jnp.float32
    i32 = jnp.int32

    W = _round_up(max(E, N, K, 8), 128)      # lane width of the packed slabs

    # ---- int32 slab: src / dst-graph / dst-local rows (padded edges -> -1 = inert)
    dst_i = dst.astype(i32)
    islab = jnp.full((3, W), -1, i32)
    islab = islab.at[0, :E].set(src.astype(i32))
    islab = islab.at[1, :E].set(dst_i // K)
    islab = islab.at[2, :E].set(dst_i % K)

    # ---- f32 slab row offsets (static, baked into the kernel)
    r_x, r_ea, r_x2d = 0, 1, 2
    r_nw1 = max(8, _round_up(r_x2d + B, 8))
    r_nw2 = _round_up(r_nw1 + K, 8)
    r_nb1 = r_nw2 + 8
    r_nb2 = r_nb1 + 1
    r_nw3 = r_nb2 + 1
    R = _round_up(r_nw3 + 1, 8)

    xf = x.astype(f32).reshape(N)
    fslab = jnp.zeros((R, W), f32)
    fslab = fslab.at[r_x, :N].set(xf)                                         # x as lane-dense row
    fslab = fslab.at[r_ea, :E].set(edge_attr.astype(f32).reshape(E))          # edge_attr row
    fslab = fslab.at[r_x2d:r_x2d + B, :K].set(xf.reshape(B, K))               # x viewed per-graph
    fslab = fslab.at[r_nw1:r_nw1 + K, :8].set(params["nw1"].astype(f32))      # (37, 8)
    fslab = fslab.at[r_nw2:r_nw2 + 8, :8].set(params["nw2"].astype(f32))      # (8, 8)
    fslab = fslab.at[r_nb1, :8].set(params["nb1"].astype(f32).reshape(8))
    fslab = fslab.at[r_nb2, :8].set(params["nb2"].astype(f32).reshape(8))
    fslab = fslab.at[r_nw3, :8].set(params["nw3"].astype(f32).reshape(8))     # nw3^T as a row

    # ---- scalar slab (SMEM): ew1(4), eb1(4), ew2(4), eb2, root, conv bias, nb3
    sparams = jnp.concatenate([
        params["ew1"].astype(f32).reshape(4),
        params["eb1"].astype(f32).reshape(4),
        params["ew2"].astype(f32).reshape(4),
        params["eb2"].astype(f32).reshape(1),
        params["root"].astype(f32).reshape(1),
        params["bias"].astype(f32).reshape(1),
        params["nb3"].astype(f32).reshape(1),
    ])                                                                        # (16,)

    kernel = functools.partial(
        _mynet2_kernel, B=B, K=K,
        r_x=r_x, r_ea=r_ea, r_x2d=r_x2d,
        r_nw1=r_nw1, r_nw2=r_nw2, r_nb1=r_nb1, r_nb2=r_nb2, r_nw3=r_nw3)

    # Single-step pallas_call: 1 SMEM + 2 VMEM DMAs total; whole forward in VMEM.
    return pl.pallas_call(
        kernel,
        out_shape=jax.ShapeDtypeStruct((B, 1), f32),
        in_specs=[
            pl.BlockSpec(memory_space=pltpu.MemorySpace.SMEM),
            pl.BlockSpec(memory_space=pltpu.MemorySpace.VMEM),
            pl.BlockSpec(memory_space=pltpu.MemorySpace.VMEM),
        ],
        out_specs=pl.BlockSpec(memory_space=pltpu.MemorySpace.VMEM),
    )(sparams, islab, fslab)


def mynet2_reference(x, src, dst, edge_attr, params, *, batch_len):
    """Pure-JAX reference matching the PyTorch MyNet2 forward."""
    hp = jax.lax.Precision.HIGHEST
    p = params
    h = jax.nn.relu(jnp.dot(edge_attr, p["ew1"], precision=hp) + p["eb1"])   # (E, 4)
    w = jnp.dot(h, p["ew2"], precision=hp) + p["eb2"]                        # (E, 1)
    msg = x[src] * w                                                         # (E, 1)
    agg = jax.ops.segment_sum(msg, dst, num_segments=x.shape[0])             # (N, 1)
    nodes = agg + jnp.dot(x, p["root"], precision=hp) + p["bias"]            # (N, 1)
    z = nodes.reshape(batch_len, -1)                                         # (B, 37)
    z = jax.nn.relu(jnp.dot(z, p["nw1"], precision=hp) + p["nb1"])
    z = jax.nn.relu(jnp.dot(z, p["nw2"], precision=hp) + p["nb2"])
    z = jax.nn.sigmoid(jnp.dot(z, p["nw3"], precision=hp) + p["nb3"])
    return 11.0 * z                                                          # LambdaLayer


if __name__ == "__main__":
    B = 2            # number of graphs in the batch  (batch.batch.unique())
    K = 37           # nodes per graph -> matches Linear(37, 8)
    N = B * K        # 74 nodes total
    E_per = 64
    E = B * E_per    # 128 edges total

    key = jax.random.PRNGKey(0)
    keys = jax.random.split(key, 16)

    x = jax.random.normal(keys[0], (N, 1), jnp.float32)
    # edges stay inside their own graph (PyG Batch semantics)
    src_local = jax.random.randint(keys[1], (B, E_per), 0, K)
    dst_local = jax.random.randint(keys[2], (B, E_per), 0, K)
    offsets = (jnp.arange(B, dtype=jnp.int32) * K)[:, None]
    src = (src_local.astype(jnp.int32) + offsets).reshape(-1)    # edge_index[0]
    dst = (dst_local.astype(jnp.int32) + offsets).reshape(-1)    # edge_index[1]
    edge_attr = jax.random.normal(keys[3], (E, 1), jnp.float32)

    params = dict(
        # NNConv edge network: Linear(1,4) -> ReLU -> Linear(4,1)
        ew1=0.5 * jax.random.normal(keys[4], (1, 4), jnp.float32),
        eb1=0.1 * jax.random.normal(keys[5], (4,), jnp.float32),
        ew2=0.5 * jax.random.normal(keys[6], (4, 1), jnp.float32),
        eb2=0.1 * jax.random.normal(keys[7], (1,), jnp.float32),
        # NNConv root weight + bias
        root=0.5 * jax.random.normal(keys[8], (1, 1), jnp.float32),
        bias=0.1 * jax.random.normal(keys[9], (1,), jnp.float32),
        # MLP head
        nw1=(1.0 / jnp.sqrt(37.0)) * jax.random.normal(keys[10], (37, 8), jnp.float32),
        nb1=0.1 * jax.random.normal(keys[11], (8,), jnp.float32),
        nw2=(1.0 / jnp.sqrt(8.0)) * jax.random.normal(keys[12], (8, 8), jnp.float32),
        nb2=0.1 * jax.random.normal(keys[13], (8,), jnp.float32),
        nw3=(1.0 / jnp.sqrt(8.0)) * jax.random.normal(keys[14], (8, 1), jnp.float32),
        nb3=0.1 * jax.random.normal(keys[15], (1,), jnp.float32),
    )

    fwd = jax.jit(functools.partial(mynet2_forward, batch_len=B))
    out = jax.block_until_ready(fwd(x, src, dst, edge_attr, params))

    ref = mynet2_reference(x, src, dst, edge_attr, params, batch_len=B)

    assert out.shape == (B, 1), out.shape
    assert jnp.allclose(out, ref, atol=1e-3, rtol=1e-3), (
        f"mismatch: max abs diff {jnp.max(jnp.abs(out - ref))}")
    print("KERNEL_OK")
</pallas_src>

<mosaic_0001>
module attributes {stable_mosaic.version = 11 : i64} {
  func.func @_mynet2_kernel(%arg0: memref<16xf32, #tpu.memory_space<smem>>, %arg1: memref<3x128xi32, #tpu.memory_space<vmem>>, %arg2: memref<64x128xf32, #tpu.memory_space<vmem>>, %arg3: memref<2x1xf32, #tpu.memory_space<vmem>>) attributes {dimension_semantics = [], scalar_prefetch = 0 : i64, scratch_operands = 0 : i64, tpu.core_type = #tpu.core_type<tc>} {
    %c1 = arith.constant 1 : index
    %c0 = arith.constant 0 : index
    %0 = vector.load %arg2[%c1, %c0] : memref<64x128xf32, #tpu.memory_space<vmem>>, vector<1x128xf32>
    %cst = arith.constant 0.000000e+00 : f32
    %1 = vector.broadcast %cst : f32 to vector<1x128xf32>
    %c0_0 = arith.constant 0 : index
    %2 = memref.load %arg0[%c0_0] : memref<16xf32, #tpu.memory_space<smem>>
    %3 = vector.broadcast %2 : f32 to vector<1x128xf32>
    %4 = arith.mulf %0, %3 : vector<1x128xf32>
    %c4 = arith.constant 4 : index
    %5 = memref.load %arg0[%c4] : memref<16xf32, #tpu.memory_space<smem>>
    %6 = vector.broadcast %5 : f32 to vector<1x128xf32>
    %7 = arith.addf %4, %6 : vector<1x128xf32>
    %cst_1 = arith.constant 0.000000e+00 : f32
    %8 = vector.broadcast %cst_1 : f32 to vector<1x128xf32>
    %9 = arith.maximumf %7, %8 : vector<1x128xf32>
    %c8 = arith.constant 8 : index
    %10 = memref.load %arg0[%c8] : memref<16xf32, #tpu.memory_space<smem>>
    %11 = vector.broadcast %10 : f32 to vector<1x128xf32>
    %12 = arith.mulf %9, %11 : vector<1x128xf32>
    %13 = arith.addf %1, %12 : vector<1x128xf32>
    %c1_2 = arith.constant 1 : index
    %14 = memref.load %arg0[%c1_2] : memref<16xf32, #tpu.memory_space<smem>>
    %15 = vector.broadcast %14 : f32 to vector<1x128xf32>
    %16 = arith.mulf %0, %15 : vector<1x128xf32>
    %c5 = arith.constant 5 : index
    %17 = memref.load %arg0[%c5] : memref<16xf32, #tpu.memory_space<smem>>
    %18 = vector.broadcast %17 : f32 to vector<1x128xf32>
    %19 = arith.addf %16, %18 : vector<1x128xf32>
    %cst_3 = arith.constant 0.000000e+00 : f32
    %20 = vector.broadcast %cst_3 : f32 to vector<1x128xf32>
    %21 = arith.maximumf %19, %20 : vector<1x128xf32>
    %c9 = arith.constant 9 : index
    %22 = memref.load %arg0[%c9] : memref<16xf32, #tpu.memory_space<smem>>
    %23 = vector.broadcast %22 : f32 to vector<1x128xf32>
    %24 = arith.mulf %21, %23 : vector<1x128xf32>
    %25 = arith.addf %13, %24 : vector<1x128xf32>
    %c2 = arith.constant 2 : index
    %26 = memref.load %arg0[%c2] : memref<16xf32, #tpu.memory_space<smem>>
    %27 = vector.broadcast %26 : f32 to vector<1x128xf32>
    %28 = arith.mulf %0, %27 : vector<1x128xf32>
    %c6 = arith.constant 6 : index
    %29 = memref.load %arg0[%c6] : memref<16xf32, #tpu.memory_space<smem>>
    %30 = vector.broadcast %29 : f32 to vector<1x128xf32>
    %31 = arith.addf %28, %30 : vector<1x128xf32>
    %cst_4 = arith.constant 0.000000e+00 : f32
    %32 = vector.broadcast %cst_4 : f32 to vector<1x128xf32>
    %33 = arith.maximumf %31, %32 : vector<1x128xf32>
    %c10 = arith.constant 10 : index
    %34 = memref.load %arg0[%c10] : memref<16xf32, #tpu.memory_space<smem>>
    %35 = vector.broadcast %34 : f32 to vector<1x128xf32>
    %36 = arith.mulf %33, %35 : vector<1x128xf32>
    %37 = arith.addf %25, %36 : vector<1x128xf32>
    %c3 = arith.constant 3 : index
    %38 = memref.load %arg0[%c3] : memref<16xf32, #tpu.memory_space<smem>>
    %39 = vector.broadcast %38 : f32 to vector<1x128xf32>
    %40 = arith.mulf %0, %39 : vector<1x128xf32>
    %c7 = arith.constant 7 : index
    %41 = memref.load %arg0[%c7] : memref<16xf32, #tpu.memory_space<smem>>
    %42 = vector.broadcast %41 : f32 to vector<1x128xf32>
    %43 = arith.addf %40, %42 : vector<1x128xf32>
    %cst_5 = arith.constant 0.000000e+00 : f32
    %44 = vector.broadcast %cst_5 : f32 to vector<1x128xf32>
    %45 = arith.maximumf %43, %44 : vector<1x128xf32>
    %c11 = arith.constant 11 : index
    %46 = memref.load %arg0[%c11] : memref<16xf32, #tpu.memory_space<smem>>
    %47 = vector.broadcast %46 : f32 to vector<1x128xf32>
    %48 = arith.mulf %45, %47 : vector<1x128xf32>
    %49 = arith.addf %37, %48 : vector<1x128xf32>
    %c12 = arith.constant 12 : index
    %50 = memref.load %arg0[%c12] : memref<16xf32, #tpu.memory_space<smem>>
    %51 = vector.broadcast %50 : f32 to vector<1x128xf32>
    %52 = arith.addf %49, %51 : vector<1x128xf32>
    %c0_6 = arith.constant 0 : index
    %c0_7 = arith.constant 0 : index
    %53 = vector.load %arg2[%c0_6, %c0_7] : memref<64x128xf32, #tpu.memory_space<vmem>>, vector<1x128xf32>
    %c0_8 = arith.constant 0 : index
    %c0_9 = arith.constant 0 : index
    %54 = vector.load %arg1[%c0_8, %c0_9] : memref<3x128xi32, #tpu.memory_space<vmem>>, vector<1x128xi32>
    %55 = tpu.iota {dimensions = array<i32: 0>} : vector<128x128xi32>
    %56 = vector.broadcast %54 : vector<1x128xi32> to vector<128x128xi32>
    %57 = arith.cmpi eq, %55, %56 : vector<128x128xi32>
    %58 = arith.extui %57 : vector<128x128xi1> to vector<128x128xi32>
    %59 = arith.sitofp %58 : vector<128x128xi32> to vector<128x128xf32>
    %cst_10 = arith.constant dense<0.000000e+00> : vector<1x128xf32>
    %60 = tpu.matmul %53, %59, %cst_10 {dimension_numbers = #tpu.dot_dimension_numbers<[1], [0], [0], [1], [0, 0, 1, 1], [], []>} : vector<1x128xf32>, vector<128x128xf32>, vector<1x128xf32> -> vector<1x128xf32>
    %61 = arith.mulf %60, %52 : vector<1x128xf32>
    %c1_11 = arith.constant 1 : index
    %c0_12 = arith.constant 0 : index
    %62 = vector.load %arg1[%c1_11, %c0_12] : memref<3x128xi32, #tpu.memory_space<vmem>>, vector<1x128xi32>
    %c2_13 = arith.constant 2 : index
    %c0_14 = arith.constant 0 : index
    %63 = vector.load %arg1[%c2_13, %c0_14] : memref<3x128xi32, #tpu.memory_space<vmem>>, vector<1x128xi32>
    %64 = tpu.iota {dimensions = array<i32: 0>} : vector<2x128xi32>
    %65 = vector.broadcast %62 : vector<1x128xi32> to vector<2x128xi32>
    %66 = arith.cmpi eq, %64, %65 : vector<2x128xi32>
    %67 = arith.extui %66 : vector<2x128xi1> to vector<2x128xi32>
    %68 = arith.sitofp %67 : vector<2x128xi32> to vector<2x128xf32>
    %69 = vector.broadcast %61 : vector<1x128xf32> to vector<2x128xf32>
    %70 = arith.mulf %68, %69 : vector<2x128xf32>
    %71 = tpu.iota {dimensions = array<i32: 0>} : vector<37x128xi32>
    %72 = vector.broadcast %63 : vector<1x128xi32> to vector<37x128xi32>
    %73 = arith.cmpi eq, %71, %72 : vector<37x128xi32>
    %74 = arith.extui %73 : vector<37x128xi1> to vector<37x128xi32>
    %75 = arith.sitofp %74 : vector<37x128xi32> to vector<37x128xf32>
    %cst_15 = arith.constant dense<0.000000e+00> : vector<2x37xf32>
    %76 = tpu.matmul %70, %75, %cst_15 {dimension_numbers = #tpu.dot_dimension_numbers<[1], [1], [0], [0], [0, 0, 1, 0], [], []>} : vector<2x128xf32>, vector<37x128xf32>, vector<2x37xf32> -> vector<2x37xf32>
    %c2_16 = arith.constant 2 : index
    %c0_17 = arith.constant 0 : index
    %77 = vector.load %arg2[%c2_16, %c0_17] : memref<64x128xf32, #tpu.memory_space<vmem>>, vector<2x37xf32>
    %c13 = arith.constant 13 : index
    %78 = memref.load %arg0[%c13] : memref<16xf32, #tpu.memory_space<smem>>
    %79 = vector.broadcast %78 : f32 to vector<2x37xf32>
    %80 = arith.mulf %77, %79 : vector<2x37xf32>
    %81 = arith.addf %76, %80 : vector<2x37xf32>
    %c14 = arith.constant 14 : index
    %82 = memref.load %arg0[%c14] : memref<16xf32, #tpu.memory_space<smem>>
    %83 = vector.broadcast %82 : f32 to vector<2x37xf32>
    %84 = arith.addf %81, %83 : vector<2x37xf32>
    %c8_18 = arith.constant 8 : index
    %c0_19 = arith.constant 0 : index
    %85 = vector.load %arg2[%c8_18, %c0_19] : memref<64x128xf32, #tpu.memory_space<vmem>>, vector<37x8xf32>
    %c56 = arith.constant 56 : index
    %c0_20 = arith.constant 0 : index
    %86 = vector.load %arg2[%c56, %c0_20] : memref<64x128xf32, #tpu.memory_space<vmem>>, vector<1x8xf32>
    %cst_21 = arith.constant dense<0.000000e+00> : vector<2x8xf32>
    %87 = tpu.matmul %84, %85, %cst_21 {dimension_numbers = #tpu.dot_dimension_numbers<[1], [0], [0], [1], [0, 0, 1, 1], [], []>} : vector<2x37xf32>, vector<37x8xf32>, vector<2x8xf32> -> vector<2x8xf32>
    %88 = vector.broadcast %86 : vector<1x8xf32> to vector<2x8xf32>
    %89 = arith.addf %87, %88 : vector<2x8xf32>
    %cst_22 = arith.constant 0.000000e+00 : f32
    %90 = vector.broadcast %cst_22 : f32 to vector<2x8xf32>
    %91 = arith.maximumf %89, %90 : vector<2x8xf32>
    %c48 = arith.constant 48 : index
    %c0_23 = arith.constant 0 : index
    %92 = vector.load %arg2[%c48, %c0_23] : memref<64x128xf32, #tpu.memory_space<vmem>>, vector<8x8xf32>
    %c57 = arith.constant 57 : index
    %c0_24 = arith.constant 0 : index
    %93 = vector.load %arg2[%c57, %c0_24] : memref<64x128xf32, #tpu.memory_space<vmem>>, vector<1x8xf32>
    %cst_25 = arith.constant dense<0.000000e+00> : vector<2x8xf32>
    %94 = tpu.matmul %91, %92, %cst_25 {dimension_numbers = #tpu.dot_dimension_numbers<[1], [0], [0], [1], [0, 0, 1, 1], [], []>} : vector<2x8xf32>, vector<8x8xf32>, vector<2x8xf32> -> vector<2x8xf32>
    %95 = vector.broadcast %93 : vector<1x8xf32> to vector<2x8xf32>
    %96 = arith.addf %94, %95 : vector<2x8xf32>
    %cst_26 = arith.constant 0.000000e+00 : f32
    %97 = vector.broadcast %cst_26 : f32 to vector<2x8xf32>
    %98 = arith.maximumf %96, %97 : vector<2x8xf32>
    %c58 = arith.constant 58 : index
    %c0_27 = arith.constant 0 : index
    %99 = vector.load %arg2[%c58, %c0_27] : memref<64x128xf32, #tpu.memory_space<vmem>>, vector<1x8xf32>
    %100 = vector.broadcast %99 : vector<1x8xf32> to vector<2x8xf32>
    %101 = arith.mulf %98, %100 : vector<2x8xf32>
    %cst_28 = arith.constant dense<0.000000e+00> : vector<2xf32>
    %102 = vector.multi_reduction <add>, %101, %cst_28 [1] : vector<2x8xf32> to vector<2xf32>
    %103 = vector.shape_cast %102 : vector<2xf32> to vector<2x1xf32>
    %c15 = arith.constant 15 : index
    %104 = memref.load %arg0[%c15] : memref<16xf32, #tpu.memory_space<smem>>
    %105 = vector.broadcast %104 : f32 to vector<2x1xf32>
    %106 = arith.addf %103, %105 : vector<2x1xf32>
    %cst_29 = arith.constant 0.000000e+00 : f32
    %107 = vector.broadcast %cst_29 : f32 to vector<2x1xf32>
    %108 = arith.subf %107, %106 : vector<2x1xf32>
    %109 = math.exp %108 : vector<2x1xf32>
    %cst_30 = arith.constant 1.000000e+00 : f32
    %110 = vector.broadcast %cst_30 : f32 to vector<2x1xf32>
    %111 = arith.addf %110, %109 : vector<2x1xf32>
    %cst_31 = arith.constant 1.100000e+01 : f32
    %112 = vector.broadcast %cst_31 : f32 to vector<2x1xf32>
    %113 = arith.divf %112, %111 : vector<2x1xf32>
    %c0_32 = arith.constant 0 : index
    %c0_33 = arith.constant 0 : index
    %114 = vector.load %arg3[%c0_32, %c0_33] : memref<2x1xf32, #tpu.memory_space<vmem>>, vector<2x1xf32>
    tpu.vector_store %arg3[%c0_32, %c0_33], %113 {strides = array<i32>} : memref<2x1xf32, #tpu.memory_space<vmem>>, vector<2x1xf32>,
    return
  }
}

</mosaic_0001>

<bundles_post_ra>
// kernel: mynet2_forward.1
= control target key start
LH: loop header
LB: loop body
LE: loop exit
PB: predicated region body
PF: predicated region fallthrough
CT: control target
= control target key end

     0   :  { %8 = vsyncpa [#allocation3], 0  ;;  %s891_s0 = inlined_call_operand.vmem [shape: f32[16], index: 0, kind: input, shape index: {}]   ;;  %s892_s1 = inlined_call_operand.vmem [shape: s32[3,128], index: 1, kind: input, shape index: {}]   ;;  %s893_s2 = inlined_call_operand.vmem [shape: f32[64,128], index: 2, kind: input, shape index: {}]   ;;  %s894_s3 = inlined_call_operand.vmem [shape: f32[2,1], index: 3, kind: output, shape index: {}]  }
   0x1   :  { %s15_s14 = sshll.u32 %s891_s0, 4  ;;  %s16_s14 = int_to_ptr.vmem [resolvable:$true] %s15_s14 }
   0x2   :  { %s733_s15 = scalar_lea.vmem %s16_s14, 16  ;;  %p738_p1 = scmp.lt.s32.totalorder %s16_s14, %s16_s14 }
   0x3   :  { %p734_p0 = scmp.ne.s32.totalorder %s16_s14, %s733_s15  ;;  %p739_p2 = scmp.lt.s32.totalorder %s733_s15, %s733_s15 }
   0x5   :  { %p740_p3 = por %p739_p2, %p738_p1 }
   0x7   :  { %p741_p4 = pnand %p740_p3, %p734_p0 }
   0x9   :  { %744 = shalt.err (!%p741_p4)
}
   0xa   :  { %s747_s16 = smov [#allocation2]  }
   0xb   :  { %18 = dma.vmem_to_smem %s16_s14, 16, %s747_s16, [#allocation3]  }
   0xc   :  { %745 = dma.done.wait [#allocation3], 16  }
   0xd   :  { %746 = vsyncadd [#allocation3], 4294967280 }
   0xe   :  { %26 = sfence }
   0xf   :  { %v77_v0 = vlaneseq  ;;  %v748_v1 = vmov 0.0|0.0   ;;  %v780_v2 = vld [vmem:[%s892_s1] ss:$0 sm:$0xff]  ;;  %vm749_vm0 = vmmov 0   ;;  %v750_v4 = vmov 0.0   ;;  %s28_s22 = sld [smem:[#allocation2]] }
  0x10   :  { %687 = vmatprep.subr.bf16.mxu0 %v748_v1  ;;  %711 = vmatprep.subr.bf16.mxu1 %v748_v1  ;;  %v751_v10 = vmov 1.0|1.0   ;;  %v570_v11 = vld [vmem:[%s892_s1 + $0x2] ss:$0 sm:$0xff]  ;;  %v75_v22 = vld [vmem:[%s893_s2] sm:$0x1] }
  0x11   :  { %v783_v3 = vshrl.u32 %v77_v0, 7  ;;  %653 = vmatprep.mubr.msk.f32.mxu0 %vm749_vm0, %v750_v4  ;;  %666 = vmatprep.mubr.msk.f32.mxu1 %vm749_vm0, %v750_v4  ;;  %v752_v23 = vmov 1.0   ;;  %s525_s23 = sld [smem:[#allocation2 + $0x1]]  ;;  %s523_s24 = sld [smem:[#allocation2 + $0x4]]  ;;  %v27_v24 = vld [vmem:[%s893_s2 + $0x1] sm:$0x1] }
  0x12   :  { %s526_s25 = sld [smem:[#allocation2 + $0x5]]  ;;  %s528_s26 = sld [smem:[#allocation2 + $0x2]]  ;;  %v568_v57 = vld [vmem:[%s892_s1 + $0x1] ss:$0 sm:$0xff]  ;;  %v327_v63 = vld [vmem:[%s893_s2 + $0x8] sm:$0xff]  ;;  %v328_v0 = vld [vmem:[%s893_s2 + $0x10] sm:$0xff] }
  0x13   :  { %v79_v5 = vadd.s32 8, %v783_v3  ;;  %vm98_vm1 = vcmp.eq.s32.totalorder %v783_v3, %v780_v2  ;;  %v80_v6 = vadd.s32 16, %v783_v3  ;;  %v81_v7 = vadd.s32 24, %v783_v3  ;;  %s529_s29 = sld [smem:[#allocation2 + $0x6]]  ;;  %s531_s30 = sld [smem:[#allocation2 + $0x3]] }
  0x14   :  { %v795_v8 = vadd.s32 32, %v783_v3  ;;  %v83_v9 = vadd.s32 40, %v783_v3  ;;  %v84_v12 = vadd.s32 48, %v783_v3  ;;  %v85_v13 = vadd.s32 56, %v783_v3  ;;  %s524_s4 = sld [smem:[#allocation2 + $0x8]]  ;;  %s527_s5 = sld [smem:[#allocation2 + $0x9]] }
  0x15   :  { %vm99_vm2 = vcmp.eq.s32.totalorder %v79_v5, %v780_v2  ;;  %vm100_vm3 = vcmp.eq.s32.totalorder %v80_v6, %v780_v2  ;;  %vm101_vm4 = vcmp.eq.s32.totalorder %v81_v7, %v780_v2  ;;  %vm235_vm9 = vcmp.eq.s32.totalorder %v783_v3, %v570_v11  ;;  %s532_s6 = sld [smem:[#allocation2 + $0x7]]  ;;  %s530_s7 = sld [smem:[#allocation2 + $0xa]] }
  0x16   :  { %vm688_vm5 = vmpackc.low %vm99_vm2, %vm98_vm1  ;;  %vm102_vm7 = vcmp.eq.s32.totalorder %v795_v8, %v780_v2  ;;  %vm103_vm8 = vcmp.eq.s32.totalorder %v83_v9, %v780_v2  ;;  %vm236_vm10 = vcmp.eq.s32.totalorder %v79_v5, %v570_v11  ;;  %v86_v14 = vadd.s32 64, %v783_v3  ;;  %s533_s8 = sld [smem:[#allocation2 + $0xb]]  ;;  %s534_s9 = sld [smem:[#allocation2 + $0xc]] }
  0x17   :  { %689 = vmatpush3.bf16.msk.msra.mxu0 %vm688_vm5, %v751_v10  ;;  %vm691_vm6 = vmpackc.low %vm101_vm4, %vm100_vm3  ;;  %v87_v15 = vadd.s32 72, %v783_v3  ;;  %vm104_vm12 = vcmp.eq.s32.totalorder %v84_v12, %v780_v2  ;;  %vm105_vm13 = vcmp.eq.s32.totalorder %v85_v13, %v780_v2  ;;  %v88_v16 = vadd.s32 80, %v783_v3  ;;  %s576_s20 = sld [smem:[#allocation2 + $0xd]]  ;;  %s582_s21 = sld [smem:[#allocation2 + $0xe]] }
  0x18   :  { %690 = vmatprep.subr.bf16.mxu0 %v748_v1  ;;  %vm694_vm11 = vmpackc.low %vm103_vm8, %vm102_vm7  ;;  %vm106_vm1 = vcmp.eq.s32.totalorder %v86_v14, %v780_v2  ;;  %v89_v17 = vadd.s32 88, %v783_v3  ;;  %vm237_vm3 = vcmp.eq.s32.totalorder %v80_v6, %v570_v11  ;;  %vm238_vm4 = vcmp.eq.s32.totalorder %v81_v7, %v570_v11 }
  0x19   :  { %vm712_vm14 = vmpackc.low %vm236_vm10, %vm235_vm9  ;;  %vm107_vm2 = vcmp.eq.s32.totalorder %v87_v15, %v780_v2  ;;  %vm108_vm7 = vcmp.eq.s32.totalorder %v88_v16, %v780_v2  ;;  %v90_v18 = vadd.s32 96, %v783_v3  ;;  %v91_v19 = vadd.s32 104, %v783_v3 }
  0x1a   :  { %713 = vmatpush3.bf16.xpose.msk.msra.mxu1 %vm712_vm14, %v751_v10  ;;  %vm697_vm15 = vmpackc.low %vm105_vm13, %vm104_vm12  ;;  %vm109_vm8 = vcmp.eq.s32.totalorder %v89_v17, %v780_v2  ;;  %v92_v20 = vadd.s32 112, %v783_v3  ;;  %v93_v21 = vadd.s32 120, %v783_v3  ;;  %v29_v25 = vstv %s28_s22 }
  0x1b   :  { %692 = vmatpush3.bf16.msk.msra.mxu0 %vm691_vm6, %v751_v10  ;;  %714 = vmatprep.subr.bf16.mxu1 %v748_v1  ;;  %vm700_vm5 = vmpackc.low %vm107_vm2, %vm106_vm1  ;;  %vm110_vm10 = vcmp.eq.s32.totalorder %v90_v18, %v780_v2  ;;  %vm239_vm1 = vcmp.eq.s32.totalorder %v795_v8, %v570_v11  ;;  %v40_v26 = vstv %s525_s23  ;;  %v30_v27 = vmul.f32 %v29_v25, %v27_v24  ;;  %v330_v8 = vld [vmem:[%s893_s2 + $0x20] sm:$0xff]  ;;  %v416_v18 = vld [vmem:[%s893_s2 + $0x30] sm:$0xff] }
  0x1c   :  { %693 = vmatprep.subr.bf16.mxu0 %v748_v1  ;;  %vm715_vm6 = vmpackc.low %vm238_vm4, %vm237_vm3  ;;  %vm112_vm13 = vcmp.eq.s32.totalorder %v92_v20, %v780_v2  ;;  %vm113_vm14 = vcmp.eq.s32.totalorder %v93_v21, %v780_v2  ;;  %v41_v28 = vmul.f32 %v40_v26, %v27_v24  ;;  %v32_v29 = vstv %s523_s24 }
  0x1d   :  { %vm703_vm9 = vmpackc.low %vm109_vm8, %vm108_vm7  ;;  %v43_v30 = vstv %s526_s25  ;;  %v51_v31 = vstv %s528_s26  ;;  %v33_v32 = vadd.f32 %v32_v29, %v30_v27  ;;  %v54_v35 = vstv %s529_s29  ;;  %v588_v27 = vld [vmem:[%s893_s2 + $0x3a] ss:$0 sm:$0xff] }
  0x1e   :  { %v44_v33 = vadd.f32 %v43_v30, %v41_v28  ;;  %v52_v34 = vmul.f32 %v51_v31, %v27_v24  ;;  %v62_v36 = vstv %s531_s30  ;;  %v36_v41 = vstv %s524_s4 }
  0x1f   :  { %695 = vmatpush3.bf16.msk.msra.mxu0 %vm694_vm11, %v751_v10  ;;  %vm111_vm11 = vcmp.eq.s32.totalorder %v91_v19, %v780_v2  ;;  %v34_v37 = vmax.f32 %v33_v32, 0.0  ;;  %v63_v40 = vmul.f32 %v62_v36, %v27_v24  ;;  %v47_v42 = vstv %s527_s5  ;;  %v583_v19 = vld [vmem:[%s893_s2 + $0x38] ss:$0 sm:$0xff]  ;;  %v586_v24 = vld [vmem:[%s893_s2 + $0x39] ss:$0 sm:$0xff]  ;;  %s589_s5 = sld [smem:[#allocation2 + $0xf]] }
  0x20   :  { %696 = vmatprep.subr.bf16.mxu0 %v748_v1  ;;  %vm706_vm12 = vmpackc.low %vm111_vm11, %vm110_vm10  ;;  %v45_v38 = vmax.f32 %v44_v33, 0.0  ;;  %v55_v39 = vadd.f32 %v54_v35, %v52_v34  ;;  %v65_v43 = vstv %s532_s6  ;;  %v58_v48 = vstv %s530_s7 }
  0x21   :  { %v37_v44 = vmul.f32 %v36_v41, %v34_v37  ;;  %v66_v47 = vadd.f32 %v65_v43, %v63_v40  ;;  %v69_v52 = vstv %s533_s8  ;;  %v73_v56 = vstv %s534_s9 }
  0x22   :  { %716 = vmatpush3.bf16.xpose.msk.msra.mxu1 %vm715_vm6, %v751_v10  ;;  %v48_v45 = vmul.f32 %v47_v42, %v45_v38  ;;  %v56_v46 = vmax.f32 %v55_v39, 0.0  ;;  %v228_v59 = vsub.s32 0, %v783_v3  ;;  %vm223_vm2 = vcmp.eq.s32.totalorder %v783_v3, %v568_v57  ;;  %v329_v3 = vld [vmem:[%s893_s2 + $0x18] sm:$0xff] }
  0x23   :  { %698 = vmatpush3.bf16.msk.msra.mxu0 %vm697_vm15, %v751_v10  ;;  %664 = vmatprep.subr.mxu1 %v750_v4  ;;  %vm709_vm15 = vmpackc.low %vm113_vm14, %vm112_vm13  ;;  %v67_v51 = vmax.f32 %v66_v47, 0.0  ;;  %v569_v2 = vsel %vm223_vm2, 1.0, %v750_v4  ;;  %v718_v6 = vpack.c.bf16 %v328_v0, %v327_v63  ;;  %v721_v9 = vpack.c.bf16 %v330_v8, %v329_v3 }
  0x24   :  { %699 = vmatprep.subr.bf16.mxu0 %v748_v1  ;;  %v49_v49 = vadd.f32 %v48_v45, %v37_v44  ;;  %v59_v50 = vmul.f32 %v58_v48, %v56_v46  ;;  %vm341_vm3 = vcmask 1044480   ;;  %v252_v11 = vstv %s576_s20 }
  0x25   :  { %v70_v54 = vmul.f32 %v69_v52, %v67_v51  ;;  %v325_v14 = vstv %s582_s21  ;;  %vm337_vm4 = vcmask 302080   ;;  %v508_v31 = vstv %s589_s5 }
  0x26   :  { %v60_v53 = vadd.f32 %v59_v50, %v49_v49  ;;  %vm516_vm6 = vcmask 1024  }
  0x27   :  { %701 = vmatpush3.bf16.msk.msra.mxu0 %vm700_vm5, %v751_v10  ;;  %vm422_vm5 = vcmask 64512  }
  0x28   :  { %702 = vmatprep.subr.bf16.mxu0 %v748_v1  ;;  %v71_v55 = vadd.f32 %v70_v54, %v60_v53 }
  0x2a   :  { %665 = vmatpush3.xpose.msk.msra.mxu1 %vm239_vm1, %v752_v23  ;;  %v74_v58 = vadd.f32 %v73_v56, %v71_v55 }
  0x2b   :  { %704 = vmatpush3.bf16.msk.msra.mxu0 %vm703_vm9, %v751_v10  ;;  %717 = vmatprep.subr.bf16.mxu1 %v748_v1 }
  0x2c   :  { %705 = vmatprep.subr.bf16.mxu0 %v748_v1 }
  0x2f   :  { %707 = vmatpush3.bf16.msk.msra.mxu0 %vm706_vm12, %v751_v10 }
  0x30   :  { %708 = vmatprep.subr.bf16.mxu0 %v748_v1 }
  0x33   :  { %710 = vmatpush3.bf16.msk.msra.mxu0 %vm709_vm15, %v751_v10  ;;  %v331_v10 = vld [vmem:[%s893_s2 + $0x28] sm:$0x1f] }
  0x36   :  { %654 = vmatmul.mubr.f32.vlgmr.msra.gmra.mrb[0].mxu0 %v75_v22 }
 0x109   :  { %v212_v60 = vpop.f32.mrb[0].mxu0 }
 0x10a   :  { %v216_v61 = vmul.f32 %v212_v60, %v74_v58  ;;  %v655_v62 = vpop.f32.mrb[1].mxu0 }
 0x10c   :  { %v229_v5 = vrot.slane %v216_v61, %v228_v59 }
 0x10e   :  { %v230_v7 = vmul.f32 %v569_v2, %v229_v5 }
 0x110   :  { %667 = vmatmul.mubr.f32.vlgmr.msra.gmra.mrb[0].mxu1 %v230_v7 }
 0x111   :  { %719 = vmatpush3.bf16.msra.mxu1 %v718_v6  ;;  %679 = vmatprep.mubr.msk.f32.mxu1 %vm749_vm0, %v750_v4 }
 0x112   :  { %720 = vmatprep.subr.bf16.mxu1 %v748_v1  ;;  %v250_v1 = vld [vmem:[%s893_s2 + $0x2] sm:$0x3] }
 0x113   :  { %v253_v12 = vmul.f32 %v252_v11, %v250_v1 }
 0x115   :  { %722 = vmatpush3.bf16.msra.mxu1 %v721_v9 }
 0x116   :  { %677 = vmatprep.subr.mxu1 %v750_v4 }
 0x119   :  { %678 = vmatpush3.msk.msra.mxu1 %vm341_vm3, %v331_v10 }
 0x11a   :  { %682 = vmatprep.subr.mxu1 %v750_v4 }
 0x1e3   :  { %v320_v13 = vpop.f32.mrb[0].mxu1 }
 0x1e4   :  { %v321_v15 = vadd.f32 %v320_v13, %v253_v12  ;;  %v668_v16 = vpop.f32.mrb[1].mxu1 }
 0x1e6   :  { %v326_v17 = vadd.f32 %v325_v14, %v321_v15 }
 0x1e8   :  { %680 = vmatmul.mubr.msk.f32.vlgmr.msra.gmra.mrb[2].mxu1 %vm337_vm4, %v326_v17 }
 0x1e9   :  { %684 = vmatprep.mubr.msk.f32.mxu1 %vm749_vm0, %v750_v4  ;;  %683 = vmatpush3.msra.mxu1 %v416_v18  ;;  %vm503_vm0 = vcmask 58368  }
 0x2bb   :  { %v411_v20 = vpop.f32.mrb[2].mxu1 }
 0x2bc   :  { %v412_v21 = vadd.f32 %v583_v19, %v411_v20  ;;  %v681_v22 = vpop.f32.mrb[3].mxu1 }
 0x2be   :  { %v415_v23 = vmax.f32 %v412_v21, 0.0 }
 0x2c0   :  { %685 = vmatmul.mubr.msk.f32.vlgmr.msra.gmra.mrb[4].mxu1 %vm422_vm5, %v415_v23 }
 0x393   :  { %v492_v4 = vpop.f32.mrb[4].mxu1 }
 0x394   :  { %v493_v25 = vadd.f32 %v586_v24, %v492_v4  ;;  %v686_v26 = vpop.f32.mrb[5].mxu1 }
 0x396   :  { %v496_v28 = vmax.f32 %v493_v25, 0.0 }
 0x398   :  { %v502_v29 = vmul.f32 %v588_v27, %v496_v28 }
 0x39a   :  { %v504_v30 = vsel %vm503_vm0, %v502_v29, 0.0 }
 0x39b   :  { %505 = vadd.xlane.f32.xlu0 %v504_v30 }
 0x428   :  { %v506_v32 = vpop.xlane.xlu0 %505 }
 0x429   :  { %v509_v33 = vadd.f32 %v508_v31, %v506_v32 }
 0x42b   :  { %v510_v34 = vsub.f32 0.0, %v509_v33 }
 0x42d   :  { %v511_v35 = vmul.f32 1.442695, %v510_v34 }
 0x42f   :  { %729 = vpow2.f32 %v511_v35 }
 0x439   :  { %v730_v36 = vpop.eup %729 }
 0x43a   :  { %v513_v37 = vadd.f32 1.0, %v730_v36 }
 0x43c   :  { %731 = vrcp.f32 %v513_v37 }
 0x446   :  { %v732_v38 = vpop.eup %731 }
 0x447   :  { %v515_v39 = vmul.f32 11.0, %v732_v38 }
 0x449   :  { %517 = vst.msk [vmem:[%s894_s3] sm:$0x3] %vm516_vm6, %v515_v39 }
 0x44a   :  { %522 = vsyncpa [#allocation3], 1 }

</bundles_post_ra>
